<compile_context>
chip_gen: v7x
topology: tpu7x:2x2x1
jax: 0.10.0
libtpu: 0.0.40
codegen_flags: <defaults>
</compile_context>

<pallas_src>
import jax
import jax.numpy as jnp
from jax.experimental import pallas as pl
from jax.experimental.pallas import tpu as pltpu

HIDDEN_SIZE1 = 15  # matches `hidden_size1` in the PyTorch module


def _fused_affine_kernel(x_ref, w_ref, b_ref, o_ref):
    # x_ref: (tb, D)  VMEM   batch tile of inputs
    # w_ref: (1, D)   VMEM   fused weight row (constant index_map -> resident)
    # b_ref: (1,)     SMEM   fused bias scalar
    # o_ref: (1, tb)  VMEM   lane-dense output row for this tile
    # (1, D) . (tb, D)^T -> (1, tb): contract over the feature dim so per-example
    # results land along lanes -> unmasked, lane-dense store.
    y = jax.lax.dot_general(
        w_ref[...], x_ref[...],
        dimension_numbers=(((1,), (1,)), ((), ())),
        preferred_element_type=jnp.float32,
    )
    o_ref[...] = (y + b_ref[0]).astype(o_ref.dtype)


def _pick_batch_tile(batch, feat):
    # Lane-dense tiles must be multiples of 128.  Prefer big tiles (mem-bound: fewer
    # grid steps = less per-step overhead) but keep >= 2 grid steps when the batch
    # allows (pipelining + megacore), and keep the double-buffered x tile far below
    # the scoped VMEM limit (~8 MiB budget here).
    vmem_cap_rows = max(128, ((8 * 1024 * 1024) // (2 * feat * 4)) // 128 * 128)
    for tb in (2048, 1024, 512, 256):
        if batch >= 2 * tb and tb <= vmem_cap_rows:
            return tb
    return 128


def linear1_hidden_layer(x, w1, b1, w2, b2, *, batch_tile=None):
    """Forward pass of Linear1HiddenLayer.

    Weights are stored pre-transposed: w1 (D, H1), b1 (1, H1), w2 (H1, 1), b2 (1, 1).
    """
    B, D = x.shape
    H1 = w1.shape[1]
    assert w1.shape == (D, H1) and b1.shape == (1, H1)
    assert w2.shape == (H1, 1) and b2.shape == (1, 1)

    x = x.astype(jnp.float32)
    w1 = w1.astype(jnp.float32)
    b1 = b1.astype(jnp.float32)
    w2 = w2.astype(jnp.float32)
    b2 = b2.astype(jnp.float32)

    # Exact algebraic fusion of the two affine layers (activation1 is None).
    w_eff = jnp.reshape(w1 @ w2, (1, D))
    b_eff = jnp.reshape(b1 @ w2 + b2, (1,))

    tb = _pick_batch_tile(B, D) if batch_tile is None else batch_tile
    assert tb % 128 == 0, "batch_tile must be a multiple of 128 (lane-dense output)"

    ntiles = pl.cdiv(B, tb)
    b_pad = ntiles * tb
    if b_pad != B:  # pad batch so every tile is full; padded rows sliced off below
        x = jnp.pad(x, ((0, b_pad - B), (0, 0)))

    out_row = pl.pallas_call(
        _fused_affine_kernel,
        out_shape=jax.ShapeDtypeStruct((1, b_pad), jnp.float32),
        grid=(ntiles,),
        in_specs=[
            pl.BlockSpec((tb, D), lambda i: (i, 0)),                # x: tiled over batch
            pl.BlockSpec((1, D), lambda i: (0, 0)),                 # w_eff: full, resident
            pl.BlockSpec(memory_space=pltpu.MemorySpace.SMEM),      # b_eff: scalar in SMEM
        ],
        out_specs=pl.BlockSpec((1, tb), lambda i: (0, i)),          # lane-dense row slab
        compiler_params=pltpu.CompilerParams(
            dimension_semantics=("parallel",),
        ),
        cost_estimate=pl.CostEstimate(
            flops=2 * b_pad * D,
            transcendentals=0,
            bytes_accessed=4 * (b_pad * D + D + b_pad),
        ),
    )(x, w_eff, b_eff)

    # (1, b_pad) -> (B, 1), dropping padded rows.
    return out_row.reshape(-1)[:B].reshape(B, 1)


def init_params(key, input_size, hidden_size):
    """Deterministic init mimicking nn.Linear's default U(-1/sqrt(fan_in), 1/sqrt(fan_in))."""
    k1, k2, k3, k4 = jax.random.split(key, 4)
    bound1 = 1.0 / jnp.sqrt(jnp.float32(input_size))
    bound2 = 1.0 / jnp.sqrt(jnp.float32(hidden_size))
    # stored as (in, out), i.e. transpose of PyTorch's (out, in)
    w1 = jax.random.uniform(k1, (input_size, hidden_size), jnp.float32, -bound1, bound1)
    b1 = jax.random.uniform(k2, (1, hidden_size), jnp.float32, -bound1, bound1)
    w2 = jax.random.uniform(k3, (hidden_size, 1), jnp.float32, -bound2, bound2)
    b2 = jax.random.uniform(k4, (1, 1), jnp.float32, -bound2, bound2)
    return w1, b1, w2, b2


if __name__ == "__main__":
    key = jax.random.PRNGKey(0)
    kx, kp = jax.random.split(key)

    batch = 200        # not a multiple of 128: exercises padding; grid=(2,) with tb=128
    input_size = 32

    x = jax.random.normal(kx, (batch, input_size), jnp.float32)
    w1, b1, w2, b2 = init_params(kp, input_size, HIDDEN_SIZE1)

    out = jax.block_until_ready(linear1_hidden_layer(x, w1, b1, w2, b2))

    # Pure-JAX reference (two separate affine layers, like the PyTorch module).
    ref = (x @ w1 + b1) @ w2 + b2
    assert out.shape == (batch, 1)
    assert jnp.allclose(out, ref, atol=1e-5, rtol=1e-5), "mismatch vs reference"

    print("KERNEL_OK")
</pallas_src>

<mosaic_0001>
module attributes {stable_mosaic.version = 11 : i64} {
  func.func @_fused_affine_kernel(%arg0: i32, %arg1: memref<128x32xf32, #tpu.memory_space<vmem>>, %arg2: memref<1x32xf32, #tpu.memory_space<vmem>>, %arg3: memref<1xf32, #tpu.memory_space<smem>>, %arg4: memref<1x128xf32, #tpu.memory_space<vmem>>) attributes {dimension_semantics = [#tpu.dimension_semantics<parallel>], iteration_bounds = array<i64: 2>, scalar_prefetch = 0 : i64, scratch_operands = 0 : i64, tpu.core_type = #tpu.core_type<tc>, window_params = [{transform_indices = @transform_0, window_bounds = array<i64: 128, 32>}, {pipeline_mode = #tpu.pipeline_mode<synchronous>, transform_indices = @transform_1, window_bounds = array<i64: 1, 32>}, {transform_indices = @transform_2, window_bounds = array<i64: 1>}, {transform_indices = @transform_3, window_bounds = array<i64: 1, 128>}]} {
    %c0 = arith.constant 0 : index
    %c0_0 = arith.constant 0 : index
    %0 = vector.load %arg2[%c0, %c0_0] : memref<1x32xf32, #tpu.memory_space<vmem>>, vector<1x32xf32>
    %c0_1 = arith.constant 0 : index
    %c0_2 = arith.constant 0 : index
    %1 = vector.load %arg1[%c0_1, %c0_2] : memref<128x32xf32, #tpu.memory_space<vmem>>, vector<128x32xf32>
    %cst = arith.constant dense<0.000000e+00> : vector<1x128xf32>
    %2 = tpu.matmul %0, %1, %cst {dimension_numbers = #tpu.dot_dimension_numbers<[1], [1], [0], [0], [0, 0, 1, 0], [], []>} : vector<1x32xf32>, vector<128x32xf32>, vector<1x128xf32> -> vector<1x128xf32>
    %c0_3 = arith.constant 0 : index
    %3 = memref.load %arg3[%c0_3] : memref<1xf32, #tpu.memory_space<smem>>
    %4 = vector.broadcast %3 : f32 to vector<1x128xf32>
    %5 = arith.addf %2, %4 : vector<1x128xf32>
    %c0_4 = arith.constant 0 : index
    %c0_5 = arith.constant 0 : index
    %6 = vector.load %arg4[%c0_4, %c0_5] : memref<1x128xf32, #tpu.memory_space<vmem>>, vector<1x128xf32>
    tpu.vector_store %arg4[%c0_4, %c0_5], %5 {strides = array<i32>} : memref<1x128xf32, #tpu.memory_space<vmem>>, vector<1x128xf32>,
    return
  }
  func.func @transform_0(%arg0: i32) -> (i32, i32) {
    %c0_i32 = arith.constant 0 : i32
    %c0_i32_0 = arith.constant 0 : i32
    return %arg0, %c0_i32 : i32, i32
  }
  func.func @transform_1(%arg0: i32) -> (i32, i32) {
    %c0_i32 = arith.constant 0 : i32
    %c0_i32_0 = arith.constant 0 : i32
    %c0_i32_1 = arith.constant 0 : i32
    return %c0_i32, %c0_i32_0 : i32, i32
  }
  func.func @transform_2(%arg0: i32) -> i32 {
    %c0_i32 = arith.constant 0 : i32
    %c0_i32_0 = arith.constant 0 : i32
    return %c0_i32 : i32
  }
  func.func @transform_3(%arg0: i32) -> (i32, i32) {
    %c0_i32 = arith.constant 0 : i32
    %c0_i32_0 = arith.constant 0 : i32
    return %c0_i32, %arg0 : i32, i32
  }
}

</mosaic_0001>

<bundles_post_ra>
// kernel: tpu_custom_call.1
= control target key start
LH: loop header
LB: loop body
LE: loop exit
PB: predicated region body
PF: predicated region fallthrough
CT: control target
= control target key end

     0   :  { %s767_s0 = inlined_call_operand.vmem [shape: f32[256,32], index: 0, kind: input, shape index: {}]   ;;  %s768_s1 = inlined_call_operand.vmem [shape: f32[1,32], index: 1, kind: input, shape index: {}]   ;;  %s769_s2 = inlined_call_operand.<no memory space> [shape: f32[1], index: 2, kind: input, shape index: {}]   ;;  %s770_s3 = inlined_call_operand.hbm [shape: f32[1,256], index: 3, kind: output, shape index: {}]  }
   0x1   :  { %8 = sst [smem:[#allocation2]] %s769_s2 }
   0x2   :  { %9 = vsyncpa [#allocation4], 0 }
   0x3   :  { %11 = vsyncpa [#allocation4 + $0x1], 0  ;;  %s624_s14 = smov 0   ;;  %s626_s15 = smov 0  }
   0x4   :  { %s628_s16 = smov 0   ;;  %s630_s17 = smov 0  }
   0x5 LB: > { %s380_s2 = sadd.s32 4294967295, %s595_s17   ;;  %s381_s18 = sadd.s32 4294967294, %s595_s17   ;;  %s595_s17 = sphi %s630_s17, %s778_s17   ;;  %s591_s16 = sphi %s628_s16, %s777_s16   ;;  %s587_s15 = sphi %s626_s15, %s776_s15   ;;  %s583_s14 = sphi %s624_s14, %s775_s14  }
   0x6   : > { %s647_s19 = sadd.s32 1, %s595_s17   ;;  %s92_s20 = sadd.s32 1, %s591_s16 }
   0x7   : > { %s89_s21 = ssub.s32 %s595_s17, %s647_s19  ;;  %p102_p0 = scmp.ne.s32.totalorder %s591_s16, %s587_s15 }
   0x8   : > { %p90_p1 = scmp.eq.s32.totalorder %s89_s21, 0  ;;  %p103_p2 = scmp.eq.s32.totalorder %s380_s2, 1 }
   0x9   : > { %p108_p3 = scmp.ne.s32.totalorder %s587_s15, %s583_s14  ;;  %p109_p4 = scmp.eq.s32.totalorder %s381_s18, 1 }
   0xa   : > { %s657_s22 = scalar_select %p90_p1, %s591_s16, %s92_s20  }
   0xb   : > { %p659_p5 = por %p103_p2, %p102_p0  ;;  %p663_p6 = por %p109_p4, %p108_p3 }
   0xc   : > { %p384_p7 = scmp.ge.s32.totalorder %s595_s17, 1  ;;  %p142_p8 = scmp.lt.s32.totalorder %s595_s17, 3 }
   0xe   : > { %p143_p9 = pnand %p384_p7, %p142_p8 }
   0xf   : > { %s669_s25 = sshll.u32 (!%p143_p9), %s380_s2, 4  ;;  %v597_v0 = vmov (!%p143_p9), 0.0|0.0   ;;  %vm598_vm0 = vmmov (!%p143_p9), 0   ;;  %v599_v1 = vmov (!%p143_p9), 0.0   ;;  %vm190_vm1 = vcmask (!%p143_p9), 261120   ;;  %s188_s6 = sld [smem:[#allocation2]] (!%p143_p9) }
  0x10   : > { %146 = sbr.rel (%p143_p9) target bundleno = 321 (0x141), region = 32  ;;  %459 = vmatprep.subr.bf16.mxu0 (!%p143_p9), %v597_v0  ;;  %p166_p10 = scmp.lt.s32.totalorder (!%p143_p9), %s669_s25, 31  ;;  %456 = vmatprep.mubr.msk.f32.mxu0 (!%p143_p9), %vm598_vm0, %v599_v1  ;;  %vm682_vm2 = vmpackc.low (!%p143_p9), %vm190_vm1, %vm190_vm1  ;;  %v171_v27 = vld [vmem:[%s768_s1] sm:$0x1] (!%p143_p9) }
  0x11   : > { %s163_s7 = sand.u32 (!%p143_p9), 1, %s587_s15   ;;  %s725_s12 = scalar_lea.hbm (!%p143_p9), %s770_s3, %s669_s25 }
  0x12   : > { %s164_s8 = scalar_lea.vmem (!%p143_p9), [#allocation3], %s163_s7  ;;  %s314_s13 = scalar_lea.sflag (!%p143_p9), [#allocation4], %s163_s7 }
  0x13   : > { %s326_s9 = sshll.u32 (!%p143_p9), %s164_s8, 4  ;;  %s600_s18 = smov (!%p143_p9), [#allocation3]   ;;  %s727_s9 = int_to_ptr.vmem [resolvable:$true] %s326_s9 }
  0x14   : > { %s533_s2 = scalar_lea.vmem (!%p143_p9), %s727_s9, 16  ;;  %s537_s20 = sshll.u32 (!%p143_p9), %s600_s18, 4  ;;  %s538_s20 = int_to_ptr.vmem [resolvable:$false] %s537_s20 }
  0x15   : > { %v189_v28 = vstv (!%p143_p9), %s188_s6  ;;  %p534_p11 = scmp.ne.s32.totalorder (!%p143_p9), %s727_s9, %s533_s2  ;;  %s539_s21 = scalar_lea.vmem (!%p143_p9), %s538_s20, 32 }
  0x16   : > { %p540_p0 = scmp.lt.s32.totalorder (!%p143_p9), %s727_s9, %s538_s20  ;;  %p541_p1 = scmp.lt.s32.totalorder (!%p143_p9), %s539_s21, %s533_s2 }
  0x17   : > { %s167_s26 = scalar_select %p166_p10, %s669_s25, 31 }
  0x18   : > { %p535_p12 = pnand %p534_p11, %p659_p5  ;;  %p542_p2 = por %p541_p1, %p540_p0 }
  0x19   : > { %s386_s27 = sshll.u32 %s167_s26, 3 }
  0x1a   : > { %s676_s30 = scalar_lea.vmem %s767_s0, %s386_s27  ;;  %p536_p13 = pneg %p535_p12 }
  0x1b   : > { %v172_v2 = vld [vmem:[%s676_s30] sm:$0xff]  ;;  %v173_v3 = vld [vmem:[%s676_s30 + $0x8] sm:$0xff]  ;;  %v174_v6 = vld [vmem:[%s676_s30 + $0x10] sm:$0xff] }
  0x1c   : > { %v460_v5 = vpack.c.bf16 %v173_v3, %v172_v2  ;;  %v175_v7 = vld [vmem:[%s676_s30 + $0x18] sm:$0xff]  ;;  %v176_v9 = vld [vmem:[%s676_s30 + $0x20] sm:$0xff]  ;;  %v177_v10 = vld [vmem:[%s676_s30 + $0x28] sm:$0xff]  ;;  %p543_p3 = pnand %p542_p2, %p536_p13 }
  0x1d   : > { %v464_v8 = vpack.c.bf16 %v175_v7, %v174_v6  ;;  %v468_v11 = vpack.c.bf16 %v177_v10, %v176_v9  ;;  %v178_v12 = vld [vmem:[%s676_s30 + $0x30] sm:$0xff]  ;;  %v179_v13 = vld [vmem:[%s676_s30 + $0x38] sm:$0xff]  ;;  %v180_v15 = vld [vmem:[%s676_s30 + $0x40] sm:$0xff] }
  0x1e   : > { %462 = vmatpush3.bf16.xpose.msk.msra.mxu0 %vm682_vm2, %v460_v5  ;;  %v472_v14 = vpack.c.bf16 %v179_v13, %v178_v12  ;;  %v181_v16 = vld [vmem:[%s676_s30 + $0x48] sm:$0xff]  ;;  %v182_v18 = vld [vmem:[%s676_s30 + $0x50] sm:$0xff]  ;;  %v183_v19 = vld [vmem:[%s676_s30 + $0x58] sm:$0xff] }
  0x1f   : > { %463 = vmatprep.subr.bf16.mxu0 %v597_v0  ;;  %v476_v17 = vpack.c.bf16 %v181_v16, %v180_v15  ;;  %v480_v20 = vpack.c.bf16 %v183_v19, %v182_v18  ;;  %v184_v21 = vld [vmem:[%s676_s30 + $0x60] sm:$0xff]  ;;  %v185_v22 = vld [vmem:[%s676_s30 + $0x68] sm:$0xff]  ;;  %v186_v24 = vld [vmem:[%s676_s30 + $0x70] sm:$0xff] }
  0x20   : > { %v484_v23 = vpack.c.bf16 %v185_v22, %v184_v21  ;;  %v187_v25 = vld [vmem:[%s676_s30 + $0x78] sm:$0xff] }
  0x21   : > { %v488_v26 = vpack.c.bf16 %v187_v25, %v186_v24 }
  0x26   : > { %466 = vmatpush3.bf16.xpose.msk.msra.mxu0 %vm682_vm2, %v464_v8 }
  0x27   : > { %467 = vmatprep.subr.bf16.mxu0 %v597_v0 }
  0x2e   : > { %470 = vmatpush3.bf16.xpose.msk.msra.mxu0 %vm682_vm2, %v468_v11 }
  0x2f   : > { %471 = vmatprep.subr.bf16.mxu0 %v597_v0 }
  0x36   : > { %474 = vmatpush3.bf16.xpose.msk.msra.mxu0 %vm682_vm2, %v472_v14 }
  0x37   : > { %475 = vmatprep.subr.bf16.mxu0 %v597_v0 }
  0x3e   : > { %478 = vmatpush3.bf16.xpose.msk.msra.mxu0 %vm682_vm2, %v476_v17 }
  0x3f   : > { %479 = vmatprep.subr.bf16.mxu0 %v597_v0 }
  0x46   : > { %482 = vmatpush3.bf16.xpose.msk.msra.mxu0 %vm682_vm2, %v480_v20 }
  0x47   : > { %483 = vmatprep.subr.bf16.mxu0 %v597_v0 }
  0x4e   : > { %486 = vmatpush3.bf16.xpose.msk.msra.mxu0 %vm682_vm2, %v484_v23 }
  0x4f   : > { %487 = vmatprep.subr.bf16.mxu0 %v597_v0 }
  0x56   : > { %490 = vmatpush3.bf16.xpose.msk.msra.mxu0 %vm682_vm2, %v488_v26 }
  0x5d   : > { %457 = vmatmul.mubr.msk.f32.vlgmr.msra.gmra.mrb[0].mxu0 %vm190_vm1, %v171_v27 }
 0x130   : > { %v308_v29 = vpop.f32.mrb[0].mxu0 }
 0x131   : > { %v309_v30 = vadd.f32 %v308_v29, %v189_v28  ;;  %v458_v31 = vpop.f32.mrb[1].mxu0 }
 0x133   : > { %312 = vst [vmem:[%s164_s8] sm:$0x1] %v309_v30 }
 0x134   : > { %546 = shalt.err (!%p543_p3)
}
 0x135   : > { %s547_s25 = scalar_lea.hbm %s725_s12, 16  ;;  %s551_s28 = scalar_lea.hbm %s770_s3, 32 }
 0x136   : > { %p548_p4 = scmp.ne.s32.totalorder %s725_s12, %s547_s25  ;;  %p552_p9 = scmp.lt.u32.totalorder %s725_s12, %s770_s3 }
 0x137   : > { %p553_p10 = scmp.lt.u32.totalorder %s551_s28, %s547_s25  ;;  %p555_p12 = scmp.lt.u32.totalorder %s547_s25, %s725_s12 }
 0x138   : > { %p549_p7 = pnand %p548_p4, %p659_p5 }
 0x139   : > { %p554_p11 = por %p553_p10, %p552_p9 }
 0x13a   : > { %p550_p8 = pneg %p549_p7 }
 0x13b   : > { %p556_p13 = por %p555_p12, %p554_p11 }
 0x13d   : > { %p557_p0 = pnand %p556_p13, %p550_p8 }
 0x13f   : > { %560 = shalt.err (!%p557_p0)
}
 0x140   : > { %491 = dma.vmem_to_hbm [thread:$0]  (%p659_p5), %s727_s9, 16, %s725_s12, %s314_s13  }
 0x141 PF: > { %p497_p1 = scmp.ge.s32.totalorder %s595_s17, 2  ;;  %s338_s4 = sand.u32 1, %s583_s14  }
 0x142   : > { %s339_s5 = scalar_lea.sflag [#allocation4], %s338_s4 }
 0x143   : > { %p494_p2 = pnand %p497_p1, %p663_p6 }
 0x145   : > { %578 = dma.done.wait (!%p494_p2), %s339_s5, 16  }
 0x146   : > { %580 = vsyncadd (!%p494_p2), %s339_s5, 4294967280  ;;  %p14_p3 = scmp.ge.s32.totalorder %s647_s19, 4   ;;  %s775_s14 = smov %s587_s15 }
 0x147   : > { %s776_s15 = smov %s591_s16  ;;  %s777_s16 = smov %s657_s22 }
 0x148   : > { %s778_s17 = smov %s647_s19  ;;  %16 = sbr.rel (!%p14_p3) target bundleno = 5 (0x5), region = 67 }
 0x14f   :  { %343 = vsyncpa [#allocation4], 1 }
 0x150   :  { %345 = vsyncpa [#allocation4 + $0x1], 1 }

</bundles_post_ra>
